<compile_context>
chip_gen: v6e
topology: v6e:2x2x1
jax: 0.10.0
libtpu: 0.0.40
codegen_flags: <defaults>
</compile_context>

<pallas_src>
import math
import jax
import jax.numpy as jnp
from jax.experimental import pallas as pl
from jax.experimental.pallas import tpu as pltpu


def _embedding_kernel(x_ref, w1_ref, b1_ref, w2_ref, b2_ref, out_ref):
    # fc -> relu -> latent, fully fused in VMEM; f32 MXU, f32 accumulation.
    h = jnp.dot(x_ref[...], w1_ref[...],
                preferred_element_type=jnp.float32)            # (TM, H)
    h = jnp.maximum(h + b1_ref[...], 0.0)                      # bias + ReLU
    z = jnp.dot(h, w2_ref[...],
                preferred_element_type=jnp.float32)            # (TM, L)
    out_ref[...] = (z + b2_ref[...]).astype(out_ref.dtype)


def embedding_forward(x, w1, b1, w2, b2, *, tile_m=8192):
    """x: (batch, seq, input_dim) -> (batch, seq, latent_dim)."""
    batch, seq, input_dim = x.shape
    hidden_dim = w1.shape[1]
    latent_dim = w2.shape[1]
    M = batch * seq

    # Row tile: large enough to amortise per-step pipeline overhead, multiple
    # of 8 (f32 sublane packing), capped near ceil(M/2) so the grid has >= 2
    # steps (keeps both v7x TensorCores busy on small inputs).
    half_m = max(8, ((pl.cdiv(M, 2) + 7) // 8) * 8)
    tm = max(8, min(tile_m, half_m))
    tm = ((tm + 7) // 8) * 8
    grid_m = pl.cdiv(M, tm)
    M_pad = grid_m * tm

    x2d = x.reshape(M, input_dim)
    if M_pad != M:
        x2d = jnp.pad(x2d, ((0, M_pad - M), (0, 0)))

    b1_2d = b1.reshape(1, hidden_dim)
    b2_2d = b2.reshape(1, latent_dim)

    flops = 2 * M_pad * (input_dim * hidden_dim + hidden_dim * latent_dim)
    bytes_accessed = (
        M_pad * input_dim * 4            # x in
        + M_pad * latent_dim * 4         # out
        + input_dim * hidden_dim * 4     # w1
        + hidden_dim * latent_dim * 4    # w2
        + hidden_dim * 4 + latent_dim * 4  # biases
    )

    out2d = pl.pallas_call(
        _embedding_kernel,
        out_shape=jax.ShapeDtypeStruct((M_pad, latent_dim), x.dtype),
        grid_spec=pltpu.PrefetchScalarGridSpec(
            num_scalar_prefetch=0,
            grid=(grid_m,),
            in_specs=[
                pl.BlockSpec((tm, input_dim), lambda i: (i, 0)),
                # Constant index_map -> weights/biases stay resident in VMEM
                # across all grid steps.
                pl.BlockSpec((input_dim, hidden_dim), lambda i: (0, 0)),
                pl.BlockSpec((1, hidden_dim), lambda i: (0, 0)),
                pl.BlockSpec((hidden_dim, latent_dim), lambda i: (0, 0)),
                pl.BlockSpec((1, latent_dim), lambda i: (0, 0)),
            ],
            out_specs=pl.BlockSpec((tm, latent_dim), lambda i: (i, 0)),
        ),
        compiler_params=pltpu.CompilerParams(
            dimension_semantics=("parallel",)),
        cost_estimate=pl.CostEstimate(
            flops=flops, transcendentals=0, bytes_accessed=bytes_accessed),
    )(x2d, w1, b1_2d, w2, b2_2d)

    # Drop row padding, restore (batch, seq, latent).
    return out2d[:M, :].reshape(batch, seq, latent_dim)


def init_params(key, input_dim, hidden_dim=64, latent_dim=32):
    """Parameter init mirroring the PyTorch module.

    fc:     nn.Linear(input_dim, hidden_dim) -> default U(-1/sqrt(in), 1/sqrt(in))
    latent: nn.Linear(hidden_dim, latent_dim) -> xavier_uniform weight, zero bias
    Stored transposed as (in, out) so the kernel does x @ W.
    """
    k1, k2, k3 = jax.random.split(key, 3)
    bound_fc = 1.0 / math.sqrt(input_dim)
    w1 = jax.random.uniform(k1, (input_dim, hidden_dim), jnp.float32,
                            minval=-bound_fc, maxval=bound_fc)
    b1 = jax.random.uniform(k2, (hidden_dim,), jnp.float32,
                            minval=-bound_fc, maxval=bound_fc)
    bound_lat = math.sqrt(6.0 / (hidden_dim + latent_dim))  # xavier_uniform
    w2 = jax.random.uniform(k3, (hidden_dim, latent_dim), jnp.float32,
                            minval=-bound_lat, maxval=bound_lat)
    b2 = jnp.zeros((latent_dim,), jnp.float32)
    return w1, b1, w2, b2


if __name__ == "__main__":
    batch, seq, input_dim = 2, 8, 16
    hidden_dim, latent_dim = 64, 32

    key = jax.random.PRNGKey(0)
    kx, kp = jax.random.split(key)
    x = jax.random.normal(kx, (batch, seq, input_dim), jnp.float32)
    w1, b1, w2, b2 = init_params(kp, input_dim, hidden_dim, latent_dim)

    out = embedding_forward(x, w1, b1, w2, b2)
    out = jax.block_until_ready(out)

    # Pure-f32 JAX reference of the module's forward pass.
    h_ref = jnp.maximum(x.reshape(-1, input_dim) @ w1 + b1, 0.0)
    z_ref = (h_ref @ w2 + b2).reshape(batch, seq, latent_dim)

    assert out.shape == (batch, seq, latent_dim)
    # Tolerance covers possible reduced-precision MXU passes for f32 operands.
    assert jnp.allclose(out, z_ref, atol=1e-2, rtol=1e-2), (
        float(jnp.max(jnp.abs(out - z_ref))))

    print("KERNEL_OK")
</pallas_src>

<mosaic_0001>
module attributes {stable_mosaic.version = 11 : i64} {
  func.func @_embedding_kernel(%arg0: i32, %arg1: memref<8x16xf32, #tpu.memory_space<vmem>>, %arg2: memref<16x64xf32, #tpu.memory_space<vmem>>, %arg3: memref<1x64xf32, #tpu.memory_space<vmem>>, %arg4: memref<64x32xf32, #tpu.memory_space<vmem>>, %arg5: memref<1x32xf32, #tpu.memory_space<vmem>>, %arg6: memref<8x32xf32, #tpu.memory_space<vmem>>) attributes {dimension_semantics = [#tpu.dimension_semantics<parallel>], iteration_bounds = array<i64: 2>, scalar_prefetch = 0 : i64, scratch_operands = 0 : i64, tpu.core_type = #tpu.core_type<tc>, window_params = [{transform_indices = @transform_0, window_bounds = array<i64: 8, 16>}, {pipeline_mode = #tpu.pipeline_mode<synchronous>, transform_indices = @transform_1, window_bounds = array<i64: 16, 64>}, {pipeline_mode = #tpu.pipeline_mode<synchronous>, transform_indices = @transform_2, window_bounds = array<i64: 1, 64>}, {pipeline_mode = #tpu.pipeline_mode<synchronous>, transform_indices = @transform_3, window_bounds = array<i64: 64, 32>}, {pipeline_mode = #tpu.pipeline_mode<synchronous>, transform_indices = @transform_4, window_bounds = array<i64: 1, 32>}, {transform_indices = @transform_5, window_bounds = array<i64: 8, 32>}]} {
    %c0 = arith.constant 0 : index
    %c0_0 = arith.constant 0 : index
    %0 = vector.load %arg1[%c0, %c0_0] : memref<8x16xf32, #tpu.memory_space<vmem>>, vector<8x16xf32>
    %c0_1 = arith.constant 0 : index
    %c0_2 = arith.constant 0 : index
    %1 = vector.load %arg2[%c0_1, %c0_2] : memref<16x64xf32, #tpu.memory_space<vmem>>, vector<16x64xf32>
    %cst = arith.constant dense<0.000000e+00> : vector<8x64xf32>
    %2 = tpu.matmul %0, %1, %cst {dimension_numbers = #tpu.dot_dimension_numbers<[1], [0], [0], [1], [0, 0, 1, 1], [], []>} : vector<8x16xf32>, vector<16x64xf32>, vector<8x64xf32> -> vector<8x64xf32>
    %c0_3 = arith.constant 0 : index
    %c0_4 = arith.constant 0 : index
    %3 = vector.load %arg3[%c0_3, %c0_4] : memref<1x64xf32, #tpu.memory_space<vmem>>, vector<1x64xf32>
    %4 = vector.broadcast %3 : vector<1x64xf32> to vector<8x64xf32>
    %5 = arith.addf %2, %4 : vector<8x64xf32>
    %cst_5 = arith.constant 0.000000e+00 : f32
    %6 = vector.broadcast %cst_5 : f32 to vector<8x64xf32>
    %7 = arith.maximumf %5, %6 : vector<8x64xf32>
    %c0_6 = arith.constant 0 : index
    %c0_7 = arith.constant 0 : index
    %8 = vector.load %arg4[%c0_6, %c0_7] : memref<64x32xf32, #tpu.memory_space<vmem>>, vector<64x32xf32>
    %cst_8 = arith.constant dense<0.000000e+00> : vector<8x32xf32>
    %9 = tpu.matmul %7, %8, %cst_8 {dimension_numbers = #tpu.dot_dimension_numbers<[1], [0], [0], [1], [0, 0, 1, 1], [], []>} : vector<8x64xf32>, vector<64x32xf32>, vector<8x32xf32> -> vector<8x32xf32>
    %c0_9 = arith.constant 0 : index
    %c0_10 = arith.constant 0 : index
    %10 = vector.load %arg5[%c0_9, %c0_10] : memref<1x32xf32, #tpu.memory_space<vmem>>, vector<1x32xf32>
    %11 = vector.broadcast %10 : vector<1x32xf32> to vector<8x32xf32>
    %12 = arith.addf %9, %11 : vector<8x32xf32>
    %c0_11 = arith.constant 0 : index
    %c0_12 = arith.constant 0 : index
    %13 = vector.load %arg6[%c0_11, %c0_12] : memref<8x32xf32, #tpu.memory_space<vmem>>, vector<8x32xf32>
    tpu.vector_store %arg6[%c0_11, %c0_12], %12 {strides = array<i32>} : memref<8x32xf32, #tpu.memory_space<vmem>>, vector<8x32xf32>,
    return
  }
  func.func @transform_0(%arg0: i32) -> (i32, i32) {
    %c0_i32 = arith.constant 0 : i32
    %c0_i32_0 = arith.constant 0 : i32
    return %arg0, %c0_i32 : i32, i32
  }
  func.func @transform_1(%arg0: i32) -> (i32, i32) {
    %c0_i32 = arith.constant 0 : i32
    %c0_i32_0 = arith.constant 0 : i32
    %c0_i32_1 = arith.constant 0 : i32
    return %c0_i32, %c0_i32_0 : i32, i32
  }
  func.func @transform_2(%arg0: i32) -> (i32, i32) {
    %c0_i32 = arith.constant 0 : i32
    %c0_i32_0 = arith.constant 0 : i32
    %c0_i32_1 = arith.constant 0 : i32
    return %c0_i32, %c0_i32_0 : i32, i32
  }
  func.func @transform_3(%arg0: i32) -> (i32, i32) {
    %c0_i32 = arith.constant 0 : i32
    %c0_i32_0 = arith.constant 0 : i32
    %c0_i32_1 = arith.constant 0 : i32
    return %c0_i32, %c0_i32_0 : i32, i32
  }
  func.func @transform_4(%arg0: i32) -> (i32, i32) {
    %c0_i32 = arith.constant 0 : i32
    %c0_i32_0 = arith.constant 0 : i32
    %c0_i32_1 = arith.constant 0 : i32
    return %c0_i32, %c0_i32_0 : i32, i32
  }
  func.func @transform_5(%arg0: i32) -> (i32, i32) {
    %c0_i32 = arith.constant 0 : i32
    %c0_i32_0 = arith.constant 0 : i32
    return %arg0, %c0_i32 : i32, i32
  }
}

</mosaic_0001>

<bundles_post_ra>
// kernel: tpu_custom_call.1
= control target key start
LH: loop header
LB: loop body
LE: loop exit
PB: predicated region body
PF: predicated region fallthrough
CT: control target
= control target key end

     0   :  { %10 = vsyncpa [#allocation3], 0  ;;  %s788_s0 = inlined_call_operand.vmem [shape: f32[16,16], index: 0, kind: input, shape index: {}]   ;;  %s789_s1 = inlined_call_operand.vmem [shape: f32[16,64], index: 1, kind: input, shape index: {}]   ;;  %s790_s2 = inlined_call_operand.vmem [shape: f32[1,64], index: 2, kind: input, shape index: {}]   ;;  %s791_s3 = inlined_call_operand.vmem [shape: f32[64,32], index: 3, kind: input, shape index: {}]   ;;  %s792_s4 = inlined_call_operand.vmem [shape: f32[1,32], index: 4, kind: input, shape index: {}]   ;;  %s793_s5 = inlined_call_operand.hbm [shape: f32[16,32], index: 5, kind: output, shape index: {}]  }
   0x1   :  { %12 = vsyncpa [#allocation3 + $0x1], 0  ;;  %s657_s18 = smov 0   ;;  %s659_s19 = smov 0  }
   0x2   :  { %s661_s20 = smov 0   ;;  %s663_s21 = smov 0  }
   0x3 LB: > { %s678_s22 = sadd.s32 4294967295, %s622_s21   ;;  %s469_s23 = sadd.s32 4294967294, %s622_s21   ;;  %s622_s21 = sphi %s663_s21, %s799_s21   ;;  %s618_s20 = sphi %s661_s20, %s798_s20   ;;  %s614_s19 = sphi %s659_s19, %s797_s19   ;;  %s610_s18 = sphi %s657_s18, %s796_s18  }
   0x4   : > { %s682_s24 = sadd.s32 1, %s622_s21   ;;  %s135_s25 = sadd.s32 1, %s618_s20 }
   0x5   : > { %s132_s26 = ssub.s32 %s622_s21, %s682_s24  ;;  %p145_p0 = scmp.ne.s32.totalorder %s618_s20, %s614_s19 }
   0x6   : > { %p133_p1 = scmp.eq.s32.totalorder %s132_s26, 0  ;;  %p146_p2 = scmp.eq.s32.totalorder %s678_s22, 1 }
   0x7   : > { %p151_p3 = scmp.ne.s32.totalorder %s614_s19, %s610_s18  ;;  %p152_p4 = scmp.eq.s32.totalorder %s469_s23, 1 }
   0x8   : > { %s693_s27 = scalar_select %p133_p1, %s618_s20, %s135_s25  }
   0x9   : > { %p695_p5 = por %p146_p2, %p145_p0  ;;  %p699_p6 = por %p152_p4, %p151_p3 }
   0xa   : > { %p472_p7 = scmp.ge.s32.totalorder %s622_s21, 1  ;;  %p189_p8 = scmp.lt.s32.totalorder %s622_s21, 3 }
   0xc   : > { %p190_p9 = pnand %p472_p7, %p189_p8 }
   0xd   : > { %p216_p10 = scmp.lt.s32.totalorder (!%p190_p9), %s678_s22, 1  ;;  %s213_s16 = sand.u32 (!%p190_p9), 1, %s614_s19  }
   0xe   : > { %193 = sbr.rel (%p190_p9) target bundleno = 430 (0x1ae), region = 40  ;;  %s473_s17 = sshll.u32 (!%p190_p9), %s213_s16, 3 }
   0xf   : > { %s480_s26 = sshll.u32 (!%p190_p9), %s678_s22, 7  ;;  %s215_s30 = scalar_lea.vmem (!%p190_p9), [#allocation2], %s473_s17 }
  0x10   : > { %s410_s6 = sshll.u32 (!%p190_p9), %s215_s30, 4  ;;  %s753_s9 = scalar_lea.hbm (!%p190_p9), %s793_s5, %s480_s26  ;;  %s411_s6 = int_to_ptr.vmem [resolvable:$true] %s410_s6 }
  0x11   : > { %s397_s10 = scalar_lea.sflag (!%p190_p9), [#allocation3], %s213_s16 }
  0x13   : > { %v222_v0 = vld [vmem:[%s789_s1 + $0x8] sm:$0xff]  ;;  %v624_v1 = vmov 0.0   ;;  %v221_v2 = vld [vmem:[%s789_s1] sm:$0xff]  ;;  %vm625_vm0 = vmmov 0   ;;  %v312_v3 = vld [vmem:[%s791_s3 + $0x38] sm:$0xff]  ;;  %s217_s11 = scalar_select %p216_p10, %s678_s22, 1 }
  0x14   : > { %495 = vmatprep.subr.mxu0 %v624_v1  ;;  %499 = vmatprep.mubr.msk.f32.mxu0 %vm625_vm0, %v624_v1  ;;  %v311_v4 = vld [vmem:[%s791_s3 + $0x30] sm:$0xff]  ;;  %vm230_vm1 = vcmask 130048   ;;  %v310_v5 = vld [vmem:[%s791_s3 + $0x28] sm:$0xff]  ;;  %v309_v7 = vld [vmem:[%s791_s3 + $0x20] sm:$0xff]  ;;  %vm320_vm2 = vcmask 523264   ;;  %vm394_vm3 = vcmask 261120  }
  0x15   : > { %496 = vmatpush3.msra.mxu0 %v222_v0  ;;  %502 = vmatprep.subr.mxu1 %v624_v1  ;;  %s474_s14 = sshll.u32 %s217_s11, 3  ;;  %v308_v8 = vld [vmem:[%s791_s3 + $0x18] sm:$0xff]  ;;  %v307_v9 = vld [vmem:[%s791_s3 + $0x10] sm:$0xff]  ;;  %v306_v10 = vld [vmem:[%s791_s3 + $0x8] sm:$0xff]  ;;  %s562_s11 = scalar_lea.vmem %s411_s6, 128 }
  0x16   : > { %497 = vmatprep.subr.mxu0 %v624_v1  ;;  %503 = vmatpush3.msra.mxu1 %v312_v3  ;;  %s219_s25 = scalar_lea.vmem %s788_s0, %s474_s14  ;;  %v305_v11 = vld [vmem:[%s791_s3] sm:$0xff]  ;;  %p563_p11 = scmp.ne.s32.totalorder %s411_s6, %s562_s11 }
  0x17   : > { %498 = vmatpush3.msra.mxu0 %v221_v2  ;;  %504 = vmatprep.subr.mxu1 %v624_v1  ;;  %v220_v6 = vld [vmem:[%s219_s25] sm:$0xff]  ;;  %s626_s22 = smov [#allocation2]  }
  0x18   : > { %505 = vmatpush3.msra.mxu1 %v311_v4  ;;  %518 = vmatprep.mubr.msk.f32.mxu1 %vm625_vm0, %v624_v1  ;;  %v475_v12 = vld [vmem:[%s790_s2] ss:$0 sm:$0xff]  ;;  %p564_p12 = pnand %p563_p11, %p695_p5  ;;  %s566_s12 = sshll.u32 %s626_s22, 4  ;;  %s567_s12 = int_to_ptr.vmem [resolvable:$false] %s566_s12 }
  0x19   : > { %506 = vmatprep.subr.mxu1 %v624_v1  ;;  %500 = vmatmul.mubr.msk.f32.vlgmr.msra.gmra.mxu0 %vm230_vm1, %v220_v6  ;;  %v477_v17 = vld [vmem:[%s792_s4] ss:$0 sm:$0xff]  ;;  %s568_s13 = scalar_lea.vmem %s567_s12, 256  ;;  %p569_p0 = scmp.lt.s32.totalorder %s411_s6, %s567_s12 }
  0x1a   : > { %507 = vmatpush3.msra.mxu1 %v310_v5  ;;  %p565_p13 = pneg %p564_p12  ;;  %p570_p1 = scmp.lt.s32.totalorder %s568_s13, %s562_s11 }
  0x1b   : > { %508 = vmatprep.subr.mxu1 %v624_v1 }
  0x1c   : > { %509 = vmatpush3.msra.mxu1 %v309_v7  ;;  %p571_p2 = por %p570_p1, %p569_p0 }
  0x1d   : > { %510 = vmatprep.subr.mxu1 %v624_v1 }
  0x1e   : > { %511 = vmatpush3.msra.mxu1 %v308_v8  ;;  %p572_p3 = pnand %p571_p2, %p565_p13 }
  0x1f   : > { %512 = vmatprep.subr.mxu1 %v624_v1 }
  0x20   : > { %513 = vmatpush3.msra.mxu1 %v307_v9 }
  0x21   : > { %514 = vmatprep.subr.mxu1 %v624_v1 }
  0x22   : > { %515 = vmatpush3.msra.mxu1 %v306_v10 }
  0x23   : > { %516 = vmatprep.subr.mxu1 %v624_v1 }
  0x24   : > { %517 = vmatpush3.msra.mxu1 %v305_v11 }
  0xd9   : > { %v300_v13 = vpop.f32.mrf.mxu0 }
  0xda   : > { %v301_v14 = vadd.f32 %v475_v12, %v300_v13 }
  0xdb   : > { %v501_v15 = vpop.f32.mrf.mxu0 }
  0xdc   : > { %v304_v16 = vmax.f32 %v301_v14, 0.0 }
  0xde   : > { %519 = vmatmul.mubr.msk.f32.vlgmr.msra.gmra.mxu1 %vm320_vm2, %v304_v16 }
 0x19e   : > { %v390_v18 = vpop.f32.mrf.mxu1 }
 0x19f   : > { %v391_v19 = vadd.f32 %v477_v17, %v390_v18 }
 0x1a0   : > { %v520_v20 = vpop.f32.mrf.mxu1 }
 0x1a1   : > { %395 = vst.msk [vmem:[%s215_s30] sm:$0xff] %vm394_vm3, %v391_v19 }
 0x1a2   : > { %575 = shalt.err (!%p572_p3)
}
 0x1a3   : > { %s576_s14 = scalar_lea.hbm %s753_s9, 128  ;;  %s580_s17 = scalar_lea.hbm %s793_s5, 256 }
 0x1a4   : > { %p577_p4 = scmp.ne.s32.totalorder %s753_s9, %s576_s14  ;;  %p581_p9 = scmp.lt.s32.totalorder %s753_s9, %s793_s5 }
 0x1a5   : > { %p582_p10 = scmp.lt.s32.totalorder %s580_s17, %s576_s14 }
 0x1a6   : > { %p578_p7 = pnand %p577_p4, %p695_p5 }
 0x1a7   : > { %p583_p11 = por %p582_p10, %p581_p9 }
 0x1a8   : > { %p579_p8 = pneg %p578_p7 }
 0x1aa   : > { %p584_p12 = pnand %p583_p11, %p579_p8 }
 0x1ac   : > { %587 = shalt.err (!%p584_p12)
}
 0x1ad   : > { %521 = dma.vmem_to_hbm [thread:$0]  (%p695_p5), %s411_s6, 128, %s753_s9, %s397_s10  }
 0x1ae PF: > { %p527_p13 = scmp.ge.s32.totalorder %s622_s21, 2  ;;  %s422_s26 = sand.u32 1, %s610_s18  }
 0x1af   : > { %s423_s30 = scalar_lea.sflag [#allocation3], %s422_s26 }
 0x1b0   : > { %p524_p0 = pnand %p527_p13, %p699_p6 }
 0x1b2   : > { %p525_p1 = pneg %p524_p0 }
 0x1b4   : > { %605 = dma.done.wait (%p525_p1), %s423_s30, 128  }
 0x1b5   : > { %607 = vsyncadd (%p525_p1), %s423_s30, 4294967168  ;;  %p15_p2 = scmp.ge.s32.totalorder %s682_s24, 4   ;;  %s796_s18 = smov %s614_s19 }
 0x1b6   : > { %s797_s19 = smov %s618_s20  ;;  %s798_s20 = smov %s693_s27 }
 0x1b7   : > { %s799_s21 = smov %s682_s24  ;;  %17 = sbr.rel (!%p15_p2) target bundleno = 3 (0x3), region = 75 }
 0x1bc   :  { %428 = vsyncpa [#allocation3], 1 }
 0x1bd   :  { %430 = vsyncpa [#allocation3 + $0x1], 1 }

</bundles_post_ra>
